<compile_context>
chip_gen: v7x
topology: tpu7x:2x2x1
jax: 0.10.0
libtpu: 0.0.40
codegen_flags: <defaults>
</compile_context>

<pallas_src>
import functools
import math

import jax
import jax.numpy as jnp
from jax.experimental import pallas as pl
from jax.experimental.pallas import tpu as pltpu


def _pe_add_kernel(x_ref, pe_ref, o_ref):
    # x_ref : (ts, B, D) input tile (x.dtype)
    # pe_ref: (ts, 1, D) matching rows of the PE table (float32)
    # o_ref : (ts, B, D) output tile (x.dtype)
    x = x_ref[...].astype(jnp.float32)
    pe = pe_ref[...].astype(jnp.float32)          # no-op when table is f32
    o_ref[...] = (x + pe).astype(o_ref.dtype)     # broadcast PE over batch axis


def make_positional_encoding_table(d_model: int, max_len: int = 5000) -> jnp.ndarray:
    """Sinusoidal PE table, shape (max_len, 1, d_model), float32 (mirrors the PyTorch buffer)."""
    position = jnp.arange(0, max_len, dtype=jnp.float32)[:, None]            # (max_len, 1)
    div_term = jnp.exp(
        jnp.arange(0, d_model, 2, dtype=jnp.float32) * (-math.log(10000.0) / d_model)
    )                                                                         # (ceil(d/2),)
    angles = position * div_term                                              # (max_len, ceil(d/2))
    pe = jnp.zeros((max_len, d_model), dtype=jnp.float32)
    pe = pe.at[:, 0::2].set(jnp.sin(angles))
    pe = pe.at[:, 1::2].set(jnp.cos(angles[:, : d_model // 2]))               # safe for odd d_model
    return pe[:, None, :]                                                     # (max_len, 1, d_model)


def _vmem_capacity_bytes() -> int:
    try:
        return int(pltpu.get_tpu_info().vmem_capacity_bytes)
    except Exception:
        return 64 * 1024 * 1024  # conservative fallback (v7x per-TC VMEM)


_VMEM_CAPACITY_BYTES = _vmem_capacity_bytes()
_VMEM_TILE_BUDGET_BYTES = int(0.42 * _VMEM_CAPACITY_BYTES)   # pipelined tile buffers
_VMEM_LIMIT_BYTES = int(0.72 * _VMEM_CAPACITY_BYTES)         # scoped VMEM limit for the kernel


def _choose_seq_tile(S: int, B: int, D: int, x_itemsize: int) -> int:
    """Largest seq tile whose double-buffered in/out/pe traffic fits the VMEM budget,
    while keeping an even grid of >= 4 steps (balanced across v7x's 2 TensorCores)."""
    # per seq-row VMEM bytes: double-buffered x in + x out, plus the f32 pe tile
    # (pe's middle dim of 1 pads to 8 sublanes -> count 8 rows of D, double-buffered).
    per_row = 2 * (2 * B * D * x_itemsize) + 2 * 8 * D * 4
    max_rows = max(1, _VMEM_TILE_BUDGET_BYTES // per_row)
    n_steps = -(-S // max_rows)              # minimum steps forced by the VMEM budget
    n_steps = max(n_steps, min(4, S))        # >= 4 steps when S allows (2 per TC on v7x)
    if n_steps % 2 and n_steps < S:
        n_steps += 1                         # even grid -> balanced megacore split
    seq_tile = -(-S // n_steps)              # ceil; guaranteed <= max_rows
    return int(max(1, min(seq_tile, S)))


@functools.partial(jax.jit, donate_argnums=(0,))
def positional_encoding_forward(x: jnp.ndarray, pe: jnp.ndarray) -> jnp.ndarray:
    """x: (S, B, D); pe: (max_len, 1, D) float32. Returns x + pe[:S] broadcast over batch."""
    S, B, D = x.shape
    assert pe.ndim == 3 and pe.shape[1] == 1 and pe.shape[2] == D, "pe must be (max_len, 1, D)"
    assert S <= pe.shape[0], "sequence longer than max_len"

    seq_tile = _choose_seq_tile(S, B, D, x.dtype.itemsize)
    grid = (-(-S // seq_tile),)

    cost = pl.CostEstimate(
        flops=S * B * D,
        transcendentals=0,
        bytes_accessed=2 * S * B * D * x.dtype.itemsize + S * D * pe.dtype.itemsize,
    )

    return pl.pallas_call(
        _pe_add_kernel,
        out_shape=jax.ShapeDtypeStruct((S, B, D), x.dtype),
        grid_spec=pltpu.PrefetchScalarGridSpec(
            num_scalar_prefetch=0,
            grid=grid,
            in_specs=[
                pl.BlockSpec((seq_tile, B, D), lambda i: (i, 0, 0)),
                # Indexes the FULL pe table over the seq axis -- no pre-slice / pre-cast.
                # Last pe block may overhang S (or even max_len); the overhang rows are
                # never written to the (masked) output block, so this is safe.
                pl.BlockSpec((seq_tile, 1, D), lambda i: (i, 0, 0)),
            ],
            out_specs=pl.BlockSpec((seq_tile, B, D), lambda i: (i, 0, 0)),
        ),
        input_output_aliases={0: 0},   # out aliases x (donated) -> no extra HBM buffer
        cost_estimate=cost,
        compiler_params=pltpu.CompilerParams(
            dimension_semantics=("parallel",),
            vmem_limit_bytes=_VMEM_LIMIT_BYTES,
        ),
    )(x, pe)


if __name__ == "__main__":
    # Small shapes consistent with the module's forward: (seq, batch, d_model)
    S, B, D = 8, 2, 32
    MAX_LEN = 64  # keep the table small for the test; module default is 5000

    key = jax.random.PRNGKey(0)
    pe = make_positional_encoding_table(D, MAX_LEN)  # (MAX_LEN, 1, D) f32

    # float32 path
    x_f32 = jax.random.normal(key, (S, B, D), dtype=jnp.float32)
    ref_f32 = x_f32 + pe[:S]                         # compute reference BEFORE donation
    out_f32 = jax.block_until_ready(positional_encoding_forward(x_f32, pe))
    assert out_f32.shape == (S, B, D)
    assert jnp.allclose(out_f32, ref_f32, atol=1e-6), "f32 mismatch vs reference"

    # bfloat16 path (f32 add inside the kernel, result cast back to bf16)
    x_bf16 = jax.random.normal(key, (S, B, D), dtype=jnp.float32).astype(jnp.bfloat16)
    ref_bf16 = (x_bf16.astype(jnp.float32) + pe[:S]).astype(jnp.bfloat16)
    out_bf16 = jax.block_until_ready(positional_encoding_forward(x_bf16, pe))
    assert out_bf16.dtype == jnp.bfloat16
    assert jnp.allclose(out_bf16.astype(jnp.float32), ref_bf16.astype(jnp.float32),
                        atol=1e-2), "bf16 mismatch vs reference"

    print("KERNEL_OK")
</pallas_src>

<mosaic_0001>
module attributes {stable_mosaic.version = 11 : i64} {
  func.func @_pe_add_kernel(%arg0: i32, %arg1: memref<2x2x32xf32, #tpu.memory_space<vmem>>, %arg2: memref<2x1x32xf32, #tpu.memory_space<vmem>>, %arg3: memref<2x2x32xf32, #tpu.memory_space<vmem>>) attributes {dimension_semantics = [#tpu.dimension_semantics<parallel>], iteration_bounds = array<i64: 4>, scalar_prefetch = 0 : i64, scratch_operands = 0 : i64, tpu.core_type = #tpu.core_type<tc>, window_params = [{transform_indices = @transform_0, window_bounds = array<i64: 2, 2, 32>}, {transform_indices = @transform_1, window_bounds = array<i64: 2, 1, 32>}, {transform_indices = @transform_2, window_bounds = array<i64: 2, 2, 32>}]} {
    %c0 = arith.constant 0 : index
    %c0_0 = arith.constant 0 : index
    %c0_1 = arith.constant 0 : index
    %0 = vector.load %arg1[%c0, %c0_0, %c0_1] : memref<2x2x32xf32, #tpu.memory_space<vmem>>, vector<2x2x32xf32>
    %c0_2 = arith.constant 0 : index
    %c0_3 = arith.constant 0 : index
    %c0_4 = arith.constant 0 : index
    %1 = vector.load %arg2[%c0_2, %c0_3, %c0_4] : memref<2x1x32xf32, #tpu.memory_space<vmem>>, vector<2x1x32xf32>
    %2 = vector.broadcast %1 : vector<2x1x32xf32> to vector<2x2x32xf32>
    %3 = arith.addf %0, %2 : vector<2x2x32xf32>
    %c0_5 = arith.constant 0 : index
    %c0_6 = arith.constant 0 : index
    %c0_7 = arith.constant 0 : index
    %4 = vector.load %arg3[%c0_5, %c0_6, %c0_7] : memref<2x2x32xf32, #tpu.memory_space<vmem>>, vector<2x2x32xf32>
    tpu.vector_store %arg3[%c0_5, %c0_6, %c0_7], %3 {strides = array<i32>} : memref<2x2x32xf32, #tpu.memory_space<vmem>>, vector<2x2x32xf32>,
    return
  }
  func.func @transform_0(%arg0: i32) -> (i32, i32, i32) {
    %c0_i32 = arith.constant 0 : i32
    %c0_i32_0 = arith.constant 0 : i32
    %c0_i32_1 = arith.constant 0 : i32
    return %arg0, %c0_i32, %c0_i32_0 : i32, i32, i32
  }
  func.func @transform_1(%arg0: i32) -> (i32, i32, i32) {
    %c0_i32 = arith.constant 0 : i32
    %c0_i32_0 = arith.constant 0 : i32
    %c0_i32_1 = arith.constant 0 : i32
    return %arg0, %c0_i32, %c0_i32_0 : i32, i32, i32
  }
  func.func @transform_2(%arg0: i32) -> (i32, i32, i32) {
    %c0_i32 = arith.constant 0 : i32
    %c0_i32_0 = arith.constant 0 : i32
    %c0_i32_1 = arith.constant 0 : i32
    return %arg0, %c0_i32, %c0_i32_0 : i32, i32, i32
  }
}

</mosaic_0001>

<bundles_post_ra>
// kernel: positional_encoding_forward.1
= control target key start
LH: loop header
LB: loop body
LE: loop exit
PB: predicated region body
PF: predicated region fallthrough
CT: control target
= control target key end

     0   :  { %7 = vsyncpa [#allocation3], 0  ;;  %s652_s0 = inlined_call_operand.hbm [shape: f32[8,2,32], index: 0, kind: input, shape index: {}, may-alias: {0,2}]   ;;  %s653_s1 = inlined_call_operand.vmem [shape: f32[64,1,32], index: 1, kind: input, shape index: {}]   ;;  %s654_s2 = inlined_call_operand.hbm [shape: f32[8,2,32], index: 2, kind: output, shape index: {}, may-alias: {0,2}]  }
   0x1   :  { %9 = vsyncpa [#allocation3 + $0x1], 0 }
   0x2   :  { %10 = vsyncpa [#allocation4], 0 }
   0x3   :  { %12 = vsyncpa [#allocation4 + $0x1], 0  ;;  %s488_s9 = smov 0   ;;  %s490_s10 = smov 0  }
   0x4   :  { %s492_s11 = smov 0   ;;  %s494_s12 = smov 0  }
   0x5 LB: > { %s509_s13 = sadd.s32 4294967295, %s465_s12   ;;  %s300_s14 = sadd.s32 4294967294, %s465_s12   ;;  %s465_s12 = sphi %s494_s12, %s666_s12   ;;  %s461_s11 = sphi %s492_s11, %s665_s11   ;;  %s457_s10 = sphi %s490_s10, %s664_s10   ;;  %s453_s9 = sphi %s488_s9, %s663_s9  }
   0x6   : > { %s513_s15 = sadd.s32 1, %s465_s12   ;;  %s25_s16 = sadd.s32 1, %s461_s11 }
   0x7   : > { %s22_s17 = ssub.s32 %s465_s12, %s513_s15  ;;  %p32_p0 = scmp.ne.s32.totalorder %s461_s11, %s457_s10 }
   0x8   : > { %p23_p1 = scmp.eq.s32.totalorder %s22_s17, 0  ;;  %p33_p2 = scmp.eq.s32.totalorder %s465_s12, 0 }
   0x9   : > { %p38_p3 = scmp.ne.s32.totalorder %s457_s10, %s453_s9  ;;  %p39_p4 = scmp.eq.s32.totalorder %s509_s13, 0 }
   0xa   : > { %s525_s18 = scalar_select %p23_p1, %s461_s11, %s25_s16  }
   0xb   : > { %p527_p5 = por %p33_p2, %p32_p0  ;;  %p531_p6 = por %p39_p4, %p38_p3 }
   0xc   : > { %p88_p7 = scmp.eq.s32.totalorder %s509_s13, 3  ;;  %p94_p8 = scmp.eq.s32.totalorder %s300_s14, 3 }
   0xd   : > { %p331_p9 = scmp.lt.s32.totalorder %s465_s12, 4  ;;  %s114_s23 = sand.u32 1, %s461_s11  }
   0xe   : > { %p537_p10 = por %p88_p7, %p32_p0  ;;  %p541_p11 = por %p94_p8, %p38_p3 }
   0xf   : > { %s317_s24 = sshll.u32 %s465_s12, 6  ;;  %s303_s25 = sshll.u32 %s114_s23, 2 }
  0x10   : > { %s658_s21 = scalar_select %p537_p10, 1, 0 }
  0x11   : > { %s659_s22 = scalar_select %p541_p11, 1, 0 }
  0x12   : > { %s550_s28 = scalar_lea.hbm %s652_s0, %s317_s24  ;;  %s118_s29 = scalar_lea.vmem [#allocation2], %s303_s25 }
  0x13   : > { %s125_s30 = sshll.u32 %s118_s29, 4  ;;  %p554_p12 = pnand %p331_p9, %p527_p5  ;;  %s558_s30 = int_to_ptr.vmem [resolvable:$true] %s125_s30 }
  0x14   : > { %s560_s4 = scalar_lea.sflag [#allocation3], %s114_s23  ;;  %s369_s5 = scalar_lea.hbm %s550_s28, 64 }
  0x15   : > { %p370_p13 = scmp.ne.s32.totalorder %s550_s28, %s369_s5  ;;  %p371_p0 = pneg %p554_p12 }
  0x16   : > { %s374_s8 = scalar_lea.hbm %s652_s0, 256  ;;  %p375_p3 = scmp.lt.u32.totalorder %s550_s28, %s652_s0 }
  0x17   : > { %p372_p1 = pnand %p371_p0, %p370_p13  ;;  %p376_p4 = scmp.lt.u32.totalorder %s374_s8, %s369_s5 }
  0x18   : > { %p378_p7 = scmp.lt.u32.totalorder %s369_s5, %s550_s28 }
  0x19   : > { %p373_p2 = pneg %p372_p1  ;;  %p377_p5 = por %p376_p4, %p375_p3 }
  0x1b   : > { %p379_p8 = por %p378_p7, %p377_p5 }
  0x1d   : > { %p380_p9 = pnand %p379_p8, %p373_p2 }
  0x1f   : > { %383 = shalt.err (!%p380_p9)
}
  0x20   : > { %s384_s17 = scalar_lea.vmem %s558_s30, 64  ;;  %s467_s19 = smov [#allocation2]  }
  0x21   : > { %p385_p13 = scmp.ne.s32.totalorder %s558_s30, %s384_s17  ;;  %s389_s23 = sshll.u32 %s467_s19, 4  ;;  %s390_s23 = int_to_ptr.vmem [resolvable:$false] %s389_s23 }
  0x22   : > { %s391_s24 = scalar_lea.vmem %s390_s23, 128  ;;  %p392_p10 = scmp.lt.s32.totalorder %s558_s30, %s390_s23 }
  0x23   : > { %p387_p1 = pnand %p385_p13, %p371_p0  ;;  %p393_p3 = scmp.lt.s32.totalorder %s391_s24, %s384_s17 }
  0x25   : > { %p388_p11 = pneg %p387_p1  ;;  %p394_p4 = por %p393_p3, %p392_p10 }
  0x27   : > { %p395_p5 = pnand %p394_p4, %p388_p11 }
  0x29   : > { %398 = shalt.err (!%p395_p5)
}
  0x2a   : > { %s468_s25 = smov 32   ;;  %s469_s26 = smov 2  }
  0x2b   : > { %326 = dma.hbm_to_vmem [thread:$0]  (!%p554_p12), %s550_s28, 64, %s558_s30, %s560_s4, %s468_s25, %s468_s25, %s469_s26  }
  0x2c   : > { %p306_p0 = scmp.ge.s32.totalorder %s465_s12, 1  ;;  %p141_p2 = scmp.lt.s32.totalorder %s465_s12, 5 }
  0x2e   : > { %p142_p7 = pnand %p306_p0, %p141_p2 }
  0x2f   : > { %s591_s27 = sand.u32 (!%p142_p7), 1, %s457_s10  }
  0x30   : > { %145 = sbr.rel (%p142_p7) target bundleno = 85 (0x55), region = 28  ;;  %s307_s29 = sshll.u32 (!%p142_p7), %s591_s27, 2 }
  0x31   : > { %s148_s5 = scalar_lea.sflag (!%p142_p7), [#allocation3], %s591_s27  ;;  %s151_s6 = scalar_lea.vmem (!%p142_p7), [#allocation2], %s307_s29 }
  0x37   : > { %444 = dma.done.wait (%p531_p6), %s148_s5, 64  }
  0x38   : > { %446 = vsyncadd (%p531_p6), %s148_s5, 4294967232  ;;  %s309_s28 = sshll.u32 %s509_s13, 1  ;;  %s175_s30 = scalar_lea.vmem [#allocation5], %s307_s29  ;;  %vm201_vm0 = vcmask 254976   ;;  %v183_v0 = vld [vmem:[%s151_s6] sm:$0x3] }
  0x39   : > { %p178_p10 = scmp.lt.s32.totalorder %s309_s28, 63  ;;  %s218_s3 = sshll.u32 %s175_s30, 4  ;;  %v184_v2 = vld [vmem:[%s151_s6 + $0x2] sm:$0x3]  ;;  %s604_s3 = int_to_ptr.vmem [resolvable:$true] %s218_s3 }
  0x3a   : > { %s318_s14 = sshll.u32 %s509_s13, 6  ;;  %s205_s19 = scalar_lea.sflag [#allocation4], %s591_s27 }
  0x3b   : > { %s668_s28 = smov (!%p178_p10, %s309_s28), 63  ;;  %s609_s17 = scalar_lea.hbm %s654_s2, %s318_s14 }
  0x3c   : > { %s180_s8 = scalar_lea.vmem %s653_s1, %s668_s28  ;;  %s399_s13 = scalar_lea.vmem %s604_s3, 64 }
  0x3d   : > { %v310_v1 = vld [vmem:[%s180_s8] ss:$0 sm:$0xff]  ;;  %v311_v4 = vld [vmem:[%s180_s8 + $0x1] ss:$0 sm:$0xff]  ;;  %p400_p6 = scmp.ne.s32.totalorder %s604_s3, %s399_s13  ;;  %p661_p11 = scmp.ne.s32.totalorder %s658_s21, 0 }
  0x3e   : > { %v199_v3 = vadd.f32 %v310_v1, %v183_v0  ;;  %v200_v5 = vadd.f32 %v311_v4, %v184_v2  ;;  %s470_s23 = smov [#allocation5]  }
  0x3f   : > { %p401_p12 = pnand %p400_p6, %p661_p11  ;;  %s403_s24 = sshll.u32 %s470_s23, 4  ;;  %s404_s24 = int_to_ptr.vmem [resolvable:$false] %s403_s24 }
  0x40   : > { %202 = vst.msk [vmem:[%s175_s30] sm:$0x3] %vm201_vm0, %v199_v3  ;;  %203 = vst.msk [vmem:[%s175_s30 + $0x2] sm:$0x3] %vm201_vm0, %v200_v5  ;;  %s405_s25 = scalar_lea.vmem %s404_s24, 128  ;;  %p406_p9 = scmp.lt.s32.totalorder %s604_s3, %s404_s24 }
  0x41   : > { %p402_p8 = pneg %p401_p12  ;;  %p407_p13 = scmp.lt.s32.totalorder %s405_s25, %s399_s13 }
  0x43   : > { %p408_p1 = por %p407_p13, %p406_p9 }
  0x45   : > { %p409_p3 = pnand %p408_p1, %p402_p8 }
  0x47   : > { %412 = shalt.err (!%p409_p3)
}
  0x48   : > { %s413_s26 = scalar_lea.hbm %s609_s17, 64  ;;  %s417_s6 = scalar_lea.hbm %s654_s2, 256 }
  0x49   : > { %p414_p4 = scmp.ne.s32.totalorder %s609_s17, %s413_s26  ;;  %p418_p2 = scmp.lt.u32.totalorder %s609_s17, %s654_s2 }
  0x4a   : > { %p419_p7 = scmp.lt.u32.totalorder %s417_s6, %s413_s26  ;;  %p421_p6 = scmp.lt.u32.totalorder %s413_s26, %s609_s17 }
  0x4b   : > { %p415_p5 = pnand %p414_p4, %p661_p11 }
  0x4c   : > { %p420_p10 = por %p419_p7, %p418_p2 }
  0x4d   : > { %p416_p0 = pneg %p415_p5 }
  0x4e   : > { %p422_p12 = por %p421_p6, %p420_p10 }
  0x50   : > { %p423_p8 = pnand %p422_p12, %p416_p0 }
  0x52   : > { %426 = shalt.err (!%p423_p8)
}
  0x53   : > { %s471_s4 = smov 32   ;;  %s472_s7 = smov 2  }
  0x54   : > { %321 = dma.vmem_to_hbm [thread:$0]  (%p661_p11), %s604_s3, 64, %s609_s17, %s205_s19, %s471_s4, %s471_s4, %s472_s7  }
  0x55 PF: > { %p332_p9 = scmp.ge.s32.totalorder %s465_s12, 2  ;;  %s233_s8 = sand.u32 1, %s453_s9  }
  0x56   : > { %p662_p13 = scmp.ne.s32.totalorder %s659_s22, 0  ;;  %s234_s14 = scalar_lea.sflag [#allocation4], %s233_s8 }
  0x58   : > { %p328_p1 = pnand %p332_p9, %p662_p13 }
  0x5a   : > { %448 = dma.done.wait (!%p328_p1), %s234_s14, 64  }
  0x5b   : > { %450 = vsyncadd (!%p328_p1), %s234_s14, 4294967232  ;;  %p15_p3 = scmp.ge.s32.totalorder %s513_s15, 6   ;;  %s663_s9 = smov %s457_s10 }
  0x5c   : > { %s664_s10 = smov %s461_s11  ;;  %s665_s11 = smov %s525_s18 }
  0x5d   : > { %s666_s12 = smov %s513_s15  ;;  %17 = sbr.rel (!%p15_p3) target bundleno = 5 (0x5), region = 76 }
  0x64   :  { %239 = vsyncpa [#allocation3], 1 }
  0x65   :  { %241 = vsyncpa [#allocation3 + $0x1], 1 }
  0x66   :  { %242 = vsyncpa [#allocation4], 1 }
  0x67   :  { %244 = vsyncpa [#allocation4 + $0x1], 1 }

</bundles_post_ra>
